<compile_context>
chip_gen: v7x
topology: tpu7x:2x2x1
jax: 0.10.0
libtpu: 0.0.40
codegen_flags: <defaults>
</compile_context>

<pallas_src>
import functools

import jax
import jax.numpy as jnp
from jax.experimental import pallas as pl
from jax.experimental.pallas import tpu as pltpu

INPUT_SIZE = 18
HIDDEN = 32
OUT = 4

B_PAD = 8      # pad batch to sublane multiple
I_PAD = 32     # pad input-feature dim (zero rows of W_ih -> no effect)
OUT_PAD = 128  # lane-dense fc output; sliced back to 4 in the wrapper

_GATE_MULT = {"rnn": 1, "lstm": 4, "gru": 3}


# ----------------------------- Pallas kernel ---------------------------------
def _recurrent_kernel(x_ref, wih_ref, whh_ref, bih_ref, bhh_ref,
                      fcw_ref, fcb_ref, out_ref, xg_ref,
                      *, cell_type, seq_len, hidden):
    H = hidden
    T = seq_len
    B = out_ref.shape[0]                       # B_PAD

    # ---- hoisted input projection over ALL timesteps (single batched GEMM) ---
    # rnn/lstm: fold b_ih + b_hh here; gru: b_hh must stay inside r*(...) term.
    if cell_type == "gru":
        bias_x = bih_ref[...]
        b_hh = bhh_ref[...]
    else:
        bias_x = bih_ref[...] + bhh_ref[...]
        b_hh = None
    xg_ref[...] = (jnp.dot(x_ref[...], wih_ref[...],
                           preferred_element_type=jnp.float32) + bias_x)

    # ---- hoist recurrent weights into vreg-resident locals --------------------
    w_hh = whh_ref[...]                        # (H, gm*H), <= 4 vregs

    def xg_at(t):
        base = pl.multiple_of(t * B, B)
        return xg_ref[pl.ds(base, B), :]       # (B, gm*H)

    def step_rnn(t, h):
        hg = jnp.dot(h, w_hh, preferred_element_type=jnp.float32)
        return jnp.tanh(xg_at(t) + hg)

    def step_lstm(t, carry):                   # PyTorch gate order: i, f, g, o
        h, c = carry
        g = xg_at(t) + jnp.dot(h, w_hh, preferred_element_type=jnp.float32)
        sg = jax.nn.sigmoid(g)                 # one full-vreg sigmoid (B, 4H)
        tg = jnp.tanh(g)                       # one full-vreg tanh    (B, 4H)
        i_g = sg[:, 0 * H:1 * H]
        f_g = sg[:, 1 * H:2 * H]
        g_g = tg[:, 2 * H:3 * H]
        o_g = sg[:, 3 * H:4 * H]
        c_new = f_g * c + i_g * g_g
        h_new = o_g * jnp.tanh(c_new)
        return (h_new, c_new)

    def step_gru(t, h):                        # PyTorch gate order: r, z, n
        xg = xg_at(t)
        hg = jnp.dot(h, w_hh, preferred_element_type=jnp.float32) + b_hh
        rz = jax.nn.sigmoid(xg[:, :2 * H] + hg[:, :2 * H])   # (B, 2H) in one pass
        r = rz[:, 0 * H:1 * H]
        z = rz[:, 1 * H:2 * H]
        n = jnp.tanh(xg[:, 2 * H:3 * H] + r * hg[:, 2 * H:3 * H])
        return (1.0 - z) * n + z * h

    unroll = True if T <= 64 else 8
    h0 = jnp.zeros((B, H), jnp.float32)
    if cell_type == "lstm":
        h_T, _ = jax.lax.fori_loop(0, T, step_lstm, (h0, h0), unroll=unroll)
    elif cell_type == "gru":
        h_T = jax.lax.fori_loop(0, T, step_gru, h0, unroll=unroll)
    else:
        h_T = jax.lax.fori_loop(0, T, step_rnn, h0, unroll=unroll)

    # fc head on the final hidden state (lane-dense (8,128) store)
    out_ref[...] = (jnp.dot(h_T, fcw_ref[...],
                            preferred_element_type=jnp.float32) + fcb_ref[...])


# ------------------------------- wrapper --------------------------------------
def predictor_forward(params, x, cell_type):
    """x: (B, T, 18) float32  ->  (B, 4) float32."""
    cell_type = cell_type.lower()
    gm = _GATE_MULT[cell_type]
    GH = gm * HIDDEN
    B, T, I = x.shape
    assert I == INPUT_SIZE and B <= B_PAD

    # time-major + padding, flattened to (T*B_PAD, I_PAD) rows for the kernel
    xk = jnp.transpose(x, (1, 0, 2))                                   # (T, B, I)
    xk = jnp.pad(xk, ((0, 0), (0, B_PAD - B), (0, I_PAD - I)))         # (T, B_PAD, I_PAD)
    xk = xk.reshape(T * B_PAD, I_PAD)

    w_ih = jnp.pad(params["w_ih"], ((0, I_PAD - I), (0, 0)))           # (I_PAD, GH)
    w_hh = params["w_hh"]                                              # (H, GH)
    b_ih = params["b_ih"].reshape(1, GH)
    b_hh = params["b_hh"].reshape(1, GH)
    fc_w = jnp.pad(params["fc_w"], ((0, 0), (0, OUT_PAD - OUT)))       # (H, OUT_PAD)
    fc_b = jnp.pad(params["fc_b"], (0, OUT_PAD - OUT)).reshape(1, OUT_PAD)

    kernel = functools.partial(_recurrent_kernel, cell_type=cell_type,
                               seq_len=T, hidden=HIDDEN)

    # TODO(synk): for very long sequences, add a time-chunked grid (BlockSpec on
    # the T axis, h/c kept in scratch across grid steps) so x is streamed/double-
    # buffered instead of fully VMEM-resident; unnecessary at these sizes.
    vmem = pl.BlockSpec(memory_space=pltpu.MemorySpace.VMEM)
    out_pad = pl.pallas_call(
        kernel,
        out_shape=jax.ShapeDtypeStruct((B_PAD, OUT_PAD), jnp.float32),
        in_specs=[vmem] * 7,
        out_specs=vmem,
        scratch_shapes=[pltpu.VMEM((T * B_PAD, GH), jnp.float32)],     # hoisted xg
    )(xk, w_ih, w_hh, b_ih, b_hh, fc_w, fc_b)

    return out_pad[:B, :OUT]


# --------------------------- pure-JAX reference --------------------------------
def predictor_reference(params, x, cell_type):
    cell_type = cell_type.lower()
    H = HIDDEN
    B, T, _ = x.shape
    h0 = jnp.zeros((B, H), jnp.float32)
    c0 = jnp.zeros((B, H), jnp.float32)

    def step(carry, x_t):
        h, c = carry
        xg = x_t @ params["w_ih"] + params["b_ih"]
        hg = h @ params["w_hh"] + params["b_hh"]
        if cell_type == "rnn":
            h_new, c_new = jnp.tanh(xg + hg), c
        elif cell_type == "lstm":
            g = xg + hg
            i_g = jax.nn.sigmoid(g[:, 0 * H:1 * H])
            f_g = jax.nn.sigmoid(g[:, 1 * H:2 * H])
            g_g = jnp.tanh(g[:, 2 * H:3 * H])
            o_g = jax.nn.sigmoid(g[:, 3 * H:4 * H])
            c_new = f_g * c + i_g * g_g
            h_new = o_g * jnp.tanh(c_new)
        else:
            r = jax.nn.sigmoid(xg[:, 0 * H:1 * H] + hg[:, 0 * H:1 * H])
            z = jax.nn.sigmoid(xg[:, 1 * H:2 * H] + hg[:, 1 * H:2 * H])
            n = jnp.tanh(xg[:, 2 * H:3 * H] + r * hg[:, 2 * H:3 * H])
            h_new, c_new = (1.0 - z) * n + z * h, c
        return (h_new, c_new), None

    (h_T, _), _ = jax.lax.scan(step, (h0, c0), jnp.transpose(x, (1, 0, 2)))
    return h_T @ params["fc_w"] + params["fc_b"]


# ------------------------------ param init ------------------------------------
def init_params(key, cell_type):
    gm = _GATE_MULT[cell_type.lower()]
    k = 1.0 / jnp.sqrt(HIDDEN)
    ks = jax.random.split(key, 6)
    u = lambda kk, shape: jax.random.uniform(kk, shape, jnp.float32, -k, k)
    return {
        "w_ih": u(ks[0], (INPUT_SIZE, gm * HIDDEN)),   # transposed vs. torch weight_ih_l0
        "w_hh": u(ks[1], (HIDDEN, gm * HIDDEN)),
        "b_ih": u(ks[2], (gm * HIDDEN,)),
        "b_hh": u(ks[3], (gm * HIDDEN,)),
        "fc_w": u(ks[4], (HIDDEN, OUT)),
        "fc_b": u(ks[5], (OUT,)),
    }


if __name__ == "__main__":
    key = jax.random.PRNGKey(0)
    kx, kp = jax.random.split(key)
    B, T = 2, 8
    x = jax.random.normal(kx, (B, T, INPUT_SIZE), jnp.float32)

    # TODO(synk): dropout/num_layers>1 variants not exercised (module defaults: 1 layer, p=0).
    for ct in ("lstm", "gru", "rnn"):
        params = init_params(jax.random.fold_in(kp, _GATE_MULT[ct]), ct)
        out = predictor_forward(params, x, ct)
        out = jax.block_until_ready(out)
        ref = predictor_reference(params, x, ct)
        assert out.shape == (B, OUT)
        assert jnp.allclose(out, ref, atol=1e-5, rtol=1e-5), f"{ct} mismatch"

    print("KERNEL_OK")
</pallas_src>

<mosaic_0001>
module attributes {stable_mosaic.version = 11 : i64} {
  func.func @_recurrent_kernel(%arg0: memref<64x32xf32, #tpu.memory_space<vmem>>, %arg1: memref<32x128xf32, #tpu.memory_space<vmem>>, %arg2: memref<32x128xf32, #tpu.memory_space<vmem>>, %arg3: memref<1x128xf32, #tpu.memory_space<vmem>>, %arg4: memref<1x128xf32, #tpu.memory_space<vmem>>, %arg5: memref<32x128xf32, #tpu.memory_space<vmem>>, %arg6: memref<1x128xf32, #tpu.memory_space<vmem>>, %arg7: memref<8x128xf32, #tpu.memory_space<vmem>>, %arg8: memref<64x128xf32, #tpu.memory_space<vmem>>) attributes {dimension_semantics = [], scalar_prefetch = 0 : i64, scratch_operands = 1 : i64, tpu.core_type = #tpu.core_type<tc>} {
    %c0 = arith.constant 0 : index
    %c0_0 = arith.constant 0 : index
    %0 = vector.load %arg3[%c0, %c0_0] : memref<1x128xf32, #tpu.memory_space<vmem>>, vector<1x128xf32>
    %c0_1 = arith.constant 0 : index
    %c0_2 = arith.constant 0 : index
    %1 = vector.load %arg4[%c0_1, %c0_2] : memref<1x128xf32, #tpu.memory_space<vmem>>, vector<1x128xf32>
    %2 = arith.addf %0, %1 : vector<1x128xf32>
    %c0_3 = arith.constant 0 : index
    %c0_4 = arith.constant 0 : index
    %3 = vector.load %arg0[%c0_3, %c0_4] : memref<64x32xf32, #tpu.memory_space<vmem>>, vector<64x32xf32>
    %c0_5 = arith.constant 0 : index
    %c0_6 = arith.constant 0 : index
    %4 = vector.load %arg1[%c0_5, %c0_6] : memref<32x128xf32, #tpu.memory_space<vmem>>, vector<32x128xf32>
    %cst = arith.constant dense<0.000000e+00> : vector<64x128xf32>
    %5 = tpu.matmul %3, %4, %cst {dimension_numbers = #tpu.dot_dimension_numbers<[1], [0], [0], [1], [0, 0, 1, 1], [], []>} : vector<64x32xf32>, vector<32x128xf32>, vector<64x128xf32> -> vector<64x128xf32>
    %6 = vector.broadcast %2 : vector<1x128xf32> to vector<64x128xf32>
    %7 = arith.addf %5, %6 : vector<64x128xf32>
    %c0_7 = arith.constant 0 : index
    %c0_8 = arith.constant 0 : index
    %8 = vector.load %arg8[%c0_7, %c0_8] : memref<64x128xf32, #tpu.memory_space<vmem>>, vector<64x128xf32>
    tpu.vector_store %arg8[%c0_7, %c0_8], %7 {strides = array<i32>} : memref<64x128xf32, #tpu.memory_space<vmem>>, vector<64x128xf32>,
    %c0_9 = arith.constant 0 : index
    %c0_10 = arith.constant 0 : index
    %9 = vector.load %arg2[%c0_9, %c0_10] : memref<32x128xf32, #tpu.memory_space<vmem>>, vector<32x128xf32>
    %cst_11 = arith.constant 0.000000e+00 : f32
    %10 = vector.broadcast %cst_11 : f32 to vector<8x32xf32>
    %c0_i32 = arith.constant 0 : i32
    %c8_i32 = arith.constant 8 : i32
    %11 = arith.muli %c0_i32, %c8_i32 : i32
    %12 = tpu.assume_multiple %11, 8 : i32
    %13 = arith.index_cast %12 : i32 to index
    %c0_12 = arith.constant 0 : index
    %14 = vector.load %arg8[%13, %c0_12] : memref<64x128xf32, #tpu.memory_space<vmem>>, vector<8x128xf32>
    %cst_13 = arith.constant dense<0.000000e+00> : vector<8x128xf32>
    %15 = tpu.matmul %10, %9, %cst_13 {dimension_numbers = #tpu.dot_dimension_numbers<[1], [0], [0], [1], [0, 0, 1, 1], [], []>} : vector<8x32xf32>, vector<32x128xf32>, vector<8x128xf32> -> vector<8x128xf32>
    %16 = arith.addf %14, %15 : vector<8x128xf32>
    %17 = arith.negf %16 : vector<8x128xf32>
    %18 = math.exp %17 : vector<8x128xf32>
    %cst_14 = arith.constant 1.000000e+00 : f32
    %19 = vector.broadcast %cst_14 : f32 to vector<8x128xf32>
    %20 = arith.addf %19, %18 : vector<8x128xf32>
    %21 = arith.divf %19, %20 : vector<8x128xf32>
    %22 = math.tanh %16 : vector<8x128xf32>
    %23 = vector.extract_strided_slice %21 {offsets = [0, 0], sizes = [8, 32], strides = [1, 1]} : vector<8x128xf32> to vector<8x32xf32>
    %24 = vector.extract_strided_slice %21 {offsets = [0, 32], sizes = [8, 32], strides = [1, 1]} : vector<8x128xf32> to vector<8x32xf32>
    %25 = vector.extract_strided_slice %22 {offsets = [0, 64], sizes = [8, 32], strides = [1, 1]} : vector<8x128xf32> to vector<8x32xf32>
    %26 = vector.extract_strided_slice %21 {offsets = [0, 96], sizes = [8, 32], strides = [1, 1]} : vector<8x128xf32> to vector<8x32xf32>
    %27 = arith.mulf %24, %10 : vector<8x32xf32>
    %28 = arith.mulf %23, %25 : vector<8x32xf32>
    %29 = arith.addf %27, %28 : vector<8x32xf32>
    %30 = math.tanh %29 : vector<8x32xf32>
    %31 = arith.mulf %26, %30 : vector<8x32xf32>
    %c1_i32 = arith.constant 1 : i32
    %c8_i32_15 = arith.constant 8 : i32
    %32 = arith.muli %c1_i32, %c8_i32_15 : i32
    %33 = tpu.assume_multiple %32, 8 : i32
    %34 = arith.index_cast %33 : i32 to index
    %c0_16 = arith.constant 0 : index
    %35 = vector.load %arg8[%34, %c0_16] : memref<64x128xf32, #tpu.memory_space<vmem>>, vector<8x128xf32>
    %cst_17 = arith.constant dense<0.000000e+00> : vector<8x128xf32>
    %36 = tpu.matmul %31, %9, %cst_17 {dimension_numbers = #tpu.dot_dimension_numbers<[1], [0], [0], [1], [0, 0, 1, 1], [], []>} : vector<8x32xf32>, vector<32x128xf32>, vector<8x128xf32> -> vector<8x128xf32>
    %37 = arith.addf %35, %36 : vector<8x128xf32>
    %38 = arith.negf %37 : vector<8x128xf32>
    %39 = math.exp %38 : vector<8x128xf32>
    %cst_18 = arith.constant 1.000000e+00 : f32
    %40 = vector.broadcast %cst_18 : f32 to vector<8x128xf32>
    %41 = arith.addf %40, %39 : vector<8x128xf32>
    %42 = arith.divf %40, %41 : vector<8x128xf32>
    %43 = math.tanh %37 : vector<8x128xf32>
    %44 = vector.extract_strided_slice %42 {offsets = [0, 0], sizes = [8, 32], strides = [1, 1]} : vector<8x128xf32> to vector<8x32xf32>
    %45 = vector.extract_strided_slice %42 {offsets = [0, 32], sizes = [8, 32], strides = [1, 1]} : vector<8x128xf32> to vector<8x32xf32>
    %46 = vector.extract_strided_slice %43 {offsets = [0, 64], sizes = [8, 32], strides = [1, 1]} : vector<8x128xf32> to vector<8x32xf32>
    %47 = vector.extract_strided_slice %42 {offsets = [0, 96], sizes = [8, 32], strides = [1, 1]} : vector<8x128xf32> to vector<8x32xf32>
    %48 = arith.mulf %45, %29 : vector<8x32xf32>
    %49 = arith.mulf %44, %46 : vector<8x32xf32>
    %50 = arith.addf %48, %49 : vector<8x32xf32>
    %51 = math.tanh %50 : vector<8x32xf32>
    %52 = arith.mulf %47, %51 : vector<8x32xf32>
    %c2_i32 = arith.constant 2 : i32
    %c8_i32_19 = arith.constant 8 : i32
    %53 = arith.muli %c2_i32, %c8_i32_19 : i32
    %54 = tpu.assume_multiple %53, 8 : i32
    %55 = arith.index_cast %54 : i32 to index
    %c0_20 = arith.constant 0 : index
    %56 = vector.load %arg8[%55, %c0_20] : memref<64x128xf32, #tpu.memory_space<vmem>>, vector<8x128xf32>
    %cst_21 = arith.constant dense<0.000000e+00> : vector<8x128xf32>
    %57 = tpu.matmul %52, %9, %cst_21 {dimension_numbers = #tpu.dot_dimension_numbers<[1], [0], [0], [1], [0, 0, 1, 1], [], []>} : vector<8x32xf32>, vector<32x128xf32>, vector<8x128xf32> -> vector<8x128xf32>
    %58 = arith.addf %56, %57 : vector<8x128xf32>
    %59 = arith.negf %58 : vector<8x128xf32>
    %60 = math.exp %59 : vector<8x128xf32>
    %cst_22 = arith.constant 1.000000e+00 : f32
    %61 = vector.broadcast %cst_22 : f32 to vector<8x128xf32>
    %62 = arith.addf %61, %60 : vector<8x128xf32>
    %63 = arith.divf %61, %62 : vector<8x128xf32>
    %64 = math.tanh %58 : vector<8x128xf32>
    %65 = vector.extract_strided_slice %63 {offsets = [0, 0], sizes = [8, 32], strides = [1, 1]} : vector<8x128xf32> to vector<8x32xf32>
    %66 = vector.extract_strided_slice %63 {offsets = [0, 32], sizes = [8, 32], strides = [1, 1]} : vector<8x128xf32> to vector<8x32xf32>
    %67 = vector.extract_strided_slice %64 {offsets = [0, 64], sizes = [8, 32], strides = [1, 1]} : vector<8x128xf32> to vector<8x32xf32>
    %68 = vector.extract_strided_slice %63 {offsets = [0, 96], sizes = [8, 32], strides = [1, 1]} : vector<8x128xf32> to vector<8x32xf32>
    %69 = arith.mulf %66, %50 : vector<8x32xf32>
    %70 = arith.mulf %65, %67 : vector<8x32xf32>
    %71 = arith.addf %69, %70 : vector<8x32xf32>
    %72 = math.tanh %71 : vector<8x32xf32>
    %73 = arith.mulf %68, %72 : vector<8x32xf32>
    %c3_i32 = arith.constant 3 : i32
    %c8_i32_23 = arith.constant 8 : i32
    %74 = arith.muli %c3_i32, %c8_i32_23 : i32
    %75 = tpu.assume_multiple %74, 8 : i32
    %76 = arith.index_cast %75 : i32 to index
    %c0_24 = arith.constant 0 : index
    %77 = vector.load %arg8[%76, %c0_24] : memref<64x128xf32, #tpu.memory_space<vmem>>, vector<8x128xf32>
    %cst_25 = arith.constant dense<0.000000e+00> : vector<8x128xf32>
    %78 = tpu.matmul %73, %9, %cst_25 {dimension_numbers = #tpu.dot_dimension_numbers<[1], [0], [0], [1], [0, 0, 1, 1], [], []>} : vector<8x32xf32>, vector<32x128xf32>, vector<8x128xf32> -> vector<8x128xf32>
    %79 = arith.addf %77, %78 : vector<8x128xf32>
    %80 = arith.negf %79 : vector<8x128xf32>
    %81 = math.exp %80 : vector<8x128xf32>
    %cst_26 = arith.constant 1.000000e+00 : f32
    %82 = vector.broadcast %cst_26 : f32 to vector<8x128xf32>
    %83 = arith.addf %82, %81 : vector<8x128xf32>
    %84 = arith.divf %82, %83 : vector<8x128xf32>
    %85 = math.tanh %79 : vector<8x128xf32>
    %86 = vector.extract_strided_slice %84 {offsets = [0, 0], sizes = [8, 32], strides = [1, 1]} : vector<8x128xf32> to vector<8x32xf32>
    %87 = vector.extract_strided_slice %84 {offsets = [0, 32], sizes = [8, 32], strides = [1, 1]} : vector<8x128xf32> to vector<8x32xf32>
    %88 = vector.extract_strided_slice %85 {offsets = [0, 64], sizes = [8, 32], strides = [1, 1]} : vector<8x128xf32> to vector<8x32xf32>
    %89 = vector.extract_strided_slice %84 {offsets = [0, 96], sizes = [8, 32], strides = [1, 1]} : vector<8x128xf32> to vector<8x32xf32>
    %90 = arith.mulf %87, %71 : vector<8x32xf32>
    %91 = arith.mulf %86, %88 : vector<8x32xf32>
    %92 = arith.addf %90, %91 : vector<8x32xf32>
    %93 = math.tanh %92 : vector<8x32xf32>
    %94 = arith.mulf %89, %93 : vector<8x32xf32>
    %c4_i32 = arith.constant 4 : i32
    %c8_i32_27 = arith.constant 8 : i32
    %95 = arith.muli %c4_i32, %c8_i32_27 : i32
    %96 = tpu.assume_multiple %95, 8 : i32
    %97 = arith.index_cast %96 : i32 to index
    %c0_28 = arith.constant 0 : index
    %98 = vector.load %arg8[%97, %c0_28] : memref<64x128xf32, #tpu.memory_space<vmem>>, vector<8x128xf32>
    %cst_29 = arith.constant dense<0.000000e+00> : vector<8x128xf32>
    %99 = tpu.matmul %94, %9, %cst_29 {dimension_numbers = #tpu.dot_dimension_numbers<[1], [0], [0], [1], [0, 0, 1, 1], [], []>} : vector<8x32xf32>, vector<32x128xf32>, vector<8x128xf32> -> vector<8x128xf32>
    %100 = arith.addf %98, %99 : vector<8x128xf32>
    %101 = arith.negf %100 : vector<8x128xf32>
    %102 = math.exp %101 : vector<8x128xf32>
    %cst_30 = arith.constant 1.000000e+00 : f32
    %103 = vector.broadcast %cst_30 : f32 to vector<8x128xf32>
    %104 = arith.addf %103, %102 : vector<8x128xf32>
    %105 = arith.divf %103, %104 : vector<8x128xf32>
    %106 = math.tanh %100 : vector<8x128xf32>
    %107 = vector.extract_strided_slice %105 {offsets = [0, 0], sizes = [8, 32], strides = [1, 1]} : vector<8x128xf32> to vector<8x32xf32>
    %108 = vector.extract_strided_slice %105 {offsets = [0, 32], sizes = [8, 32], strides = [1, 1]} : vector<8x128xf32> to vector<8x32xf32>
    %109 = vector.extract_strided_slice %106 {offsets = [0, 64], sizes = [8, 32], strides = [1, 1]} : vector<8x128xf32> to vector<8x32xf32>
    %110 = vector.extract_strided_slice %105 {offsets = [0, 96], sizes = [8, 32], strides = [1, 1]} : vector<8x128xf32> to vector<8x32xf32>
    %111 = arith.mulf %108, %92 : vector<8x32xf32>
    %112 = arith.mulf %107, %109 : vector<8x32xf32>
    %113 = arith.addf %111, %112 : vector<8x32xf32>
    %114 = math.tanh %113 : vector<8x32xf32>
    %115 = arith.mulf %110, %114 : vector<8x32xf32>
    %c5_i32 = arith.constant 5 : i32
    %c8_i32_31 = arith.constant 8 : i32
    %116 = arith.muli %c5_i32, %c8_i32_31 : i32
    %117 = tpu.assume_multiple %116, 8 : i32
    %118 = arith.index_cast %117 : i32 to index
    %c0_32 = arith.constant 0 : index
    %119 = vector.load %arg8[%118, %c0_32] : memref<64x128xf32, #tpu.memory_space<vmem>>, vector<8x128xf32>
    %cst_33 = arith.constant dense<0.000000e+00> : vector<8x128xf32>
    %120 = tpu.matmul %115, %9, %cst_33 {dimension_numbers = #tpu.dot_dimension_numbers<[1], [0], [0], [1], [0, 0, 1, 1], [], []>} : vector<8x32xf32>, vector<32x128xf32>, vector<8x128xf32> -> vector<8x128xf32>
    %121 = arith.addf %119, %120 : vector<8x128xf32>
    %122 = arith.negf %121 : vector<8x128xf32>
    %123 = math.exp %122 : vector<8x128xf32>
    %cst_34 = arith.constant 1.000000e+00 : f32
    %124 = vector.broadcast %cst_34 : f32 to vector<8x128xf32>
    %125 = arith.addf %124, %123 : vector<8x128xf32>
    %126 = arith.divf %124, %125 : vector<8x128xf32>
    %127 = math.tanh %121 : vector<8x128xf32>
    %128 = vector.extract_strided_slice %126 {offsets = [0, 0], sizes = [8, 32], strides = [1, 1]} : vector<8x128xf32> to vector<8x32xf32>
    %129 = vector.extract_strided_slice %126 {offsets = [0, 32], sizes = [8, 32], strides = [1, 1]} : vector<8x128xf32> to vector<8x32xf32>
    %130 = vector.extract_strided_slice %127 {offsets = [0, 64], sizes = [8, 32], strides = [1, 1]} : vector<8x128xf32> to vector<8x32xf32>
    %131 = vector.extract_strided_slice %126 {offsets = [0, 96], sizes = [8, 32], strides = [1, 1]} : vector<8x128xf32> to vector<8x32xf32>
    %132 = arith.mulf %129, %113 : vector<8x32xf32>
    %133 = arith.mulf %128, %130 : vector<8x32xf32>
    %134 = arith.addf %132, %133 : vector<8x32xf32>
    %135 = math.tanh %134 : vector<8x32xf32>
    %136 = arith.mulf %131, %135 : vector<8x32xf32>
    %c6_i32 = arith.constant 6 : i32
    %c8_i32_35 = arith.constant 8 : i32
    %137 = arith.muli %c6_i32, %c8_i32_35 : i32
    %138 = tpu.assume_multiple %137, 8 : i32
    %139 = arith.index_cast %138 : i32 to index
    %c0_36 = arith.constant 0 : index
    %140 = vector.load %arg8[%139, %c0_36] : memref<64x128xf32, #tpu.memory_space<vmem>>, vector<8x128xf32>
    %cst_37 = arith.constant dense<0.000000e+00> : vector<8x128xf32>
    %141 = tpu.matmul %136, %9, %cst_37 {dimension_numbers = #tpu.dot_dimension_numbers<[1], [0], [0], [1], [0, 0, 1, 1], [], []>} : vector<8x32xf32>, vector<32x128xf32>, vector<8x128xf32> -> vector<8x128xf32>
    %142 = arith.addf %140, %141 : vector<8x128xf32>
    %143 = arith.negf %142 : vector<8x128xf32>
    %144 = math.exp %143 : vector<8x128xf32>
    %cst_38 = arith.constant 1.000000e+00 : f32
    %145 = vector.broadcast %cst_38 : f32 to vector<8x128xf32>
    %146 = arith.addf %145, %144 : vector<8x128xf32>
    %147 = arith.divf %145, %146 : vector<8x128xf32>
    %148 = math.tanh %142 : vector<8x128xf32>
    %149 = vector.extract_strided_slice %147 {offsets = [0, 0], sizes = [8, 32], strides = [1, 1]} : vector<8x128xf32> to vector<8x32xf32>
    %150 = vector.extract_strided_slice %147 {offsets = [0, 32], sizes = [8, 32], strides = [1, 1]} : vector<8x128xf32> to vector<8x32xf32>
    %151 = vector.extract_strided_slice %148 {offsets = [0, 64], sizes = [8, 32], strides = [1, 1]} : vector<8x128xf32> to vector<8x32xf32>
    %152 = vector.extract_strided_slice %147 {offsets = [0, 96], sizes = [8, 32], strides = [1, 1]} : vector<8x128xf32> to vector<8x32xf32>
    %153 = arith.mulf %150, %134 : vector<8x32xf32>
    %154 = arith.mulf %149, %151 : vector<8x32xf32>
    %155 = arith.addf %153, %154 : vector<8x32xf32>
    %156 = math.tanh %155 : vector<8x32xf32>
    %157 = arith.mulf %152, %156 : vector<8x32xf32>
    %c7_i32 = arith.constant 7 : i32
    %c8_i32_39 = arith.constant 8 : i32
    %158 = arith.muli %c7_i32, %c8_i32_39 : i32
    %159 = tpu.assume_multiple %158, 8 : i32
    %160 = arith.index_cast %159 : i32 to index
    %c0_40 = arith.constant 0 : index
    %161 = vector.load %arg8[%160, %c0_40] : memref<64x128xf32, #tpu.memory_space<vmem>>, vector<8x128xf32>
    %cst_41 = arith.constant dense<0.000000e+00> : vector<8x128xf32>
    %162 = tpu.matmul %157, %9, %cst_41 {dimension_numbers = #tpu.dot_dimension_numbers<[1], [0], [0], [1], [0, 0, 1, 1], [], []>} : vector<8x32xf32>, vector<32x128xf32>, vector<8x128xf32> -> vector<8x128xf32>
    %163 = arith.addf %161, %162 : vector<8x128xf32>
    %164 = arith.negf %163 : vector<8x128xf32>
    %165 = math.exp %164 : vector<8x128xf32>
    %cst_42 = arith.constant 1.000000e+00 : f32
    %166 = vector.broadcast %cst_42 : f32 to vector<8x128xf32>
    %167 = arith.addf %166, %165 : vector<8x128xf32>
    %168 = arith.divf %166, %167 : vector<8x128xf32>
    %169 = math.tanh %163 : vector<8x128xf32>
    %170 = vector.extract_strided_slice %168 {offsets = [0, 0], sizes = [8, 32], strides = [1, 1]} : vector<8x128xf32> to vector<8x32xf32>
    %171 = vector.extract_strided_slice %168 {offsets = [0, 32], sizes = [8, 32], strides = [1, 1]} : vector<8x128xf32> to vector<8x32xf32>
    %172 = vector.extract_strided_slice %169 {offsets = [0, 64], sizes = [8, 32], strides = [1, 1]} : vector<8x128xf32> to vector<8x32xf32>
    %173 = vector.extract_strided_slice %168 {offsets = [0, 96], sizes = [8, 32], strides = [1, 1]} : vector<8x128xf32> to vector<8x32xf32>
    %174 = arith.mulf %171, %155 : vector<8x32xf32>
    %175 = arith.mulf %170, %172 : vector<8x32xf32>
    %176 = arith.addf %174, %175 : vector<8x32xf32>
    %177 = math.tanh %176 : vector<8x32xf32>
    %178 = arith.mulf %173, %177 : vector<8x32xf32>
    %c8_i32_43 = arith.constant 8 : i32
    %c0_44 = arith.constant 0 : index
    %c0_45 = arith.constant 0 : index
    %179 = vector.load %arg5[%c0_44, %c0_45] : memref<32x128xf32, #tpu.memory_space<vmem>>, vector<32x128xf32>
    %cst_46 = arith.constant dense<0.000000e+00> : vector<8x128xf32>
    %180 = tpu.matmul %178, %179, %cst_46 {dimension_numbers = #tpu.dot_dimension_numbers<[1], [0], [0], [1], [0, 0, 1, 1], [], []>} : vector<8x32xf32>, vector<32x128xf32>, vector<8x128xf32> -> vector<8x128xf32>
    %c0_47 = arith.constant 0 : index
    %c0_48 = arith.constant 0 : index
    %181 = vector.load %arg6[%c0_47, %c0_48] : memref<1x128xf32, #tpu.memory_space<vmem>>, vector<1x128xf32>
    %182 = vector.broadcast %181 : vector<1x128xf32> to vector<8x128xf32>
    %183 = arith.addf %180, %182 : vector<8x128xf32>
    %c0_49 = arith.constant 0 : index
    %c0_50 = arith.constant 0 : index
    %184 = vector.load %arg7[%c0_49, %c0_50] : memref<8x128xf32, #tpu.memory_space<vmem>>, vector<8x128xf32>
    tpu.vector_store %arg7[%c0_49, %c0_50], %183 {strides = array<i32>} : memref<8x128xf32, #tpu.memory_space<vmem>>, vector<8x128xf32>,
    return
  }
}

</mosaic_0001>

<bundles_post_ra>
// kernel: tpu_custom_call.1
= control target key start
LH: loop header
LB: loop body
LE: loop exit
PB: predicated region body
PF: predicated region fallthrough
CT: control target
= control target key end

     0   :  { %vm48_vm0 = vcmask 261120   ;;  %v1461_v4 = vmov 0.0|0.0   ;;  %vm1462_vm1 = vmmov 0   ;;  %v1463_v13 = vmov 0.0   ;;  %s1715_s0 = inlined_call_operand.vmem [shape: f32[64,32], index: 0, kind: input, shape index: {}]   ;;  %s1716_s1 = inlined_call_operand.vmem [shape: f32[32,128], index: 1, kind: input, shape index: {}]   ;;  %s1717_s2 = inlined_call_operand.vmem [shape: f32[32,128], index: 2, kind: input, shape index: {}]   ;;  %s1718_s3 = inlined_call_operand.vmem [shape: f32[1,128], index: 3, kind: input, shape index: {}]   ;;  %s1719_s4 = inlined_call_operand.vmem [shape: f32[1,128], index: 4, kind: input, shape index: {}]   ;;  %s1720_s5 = inlined_call_operand.vmem [shape: f32[32,128], index: 5, kind: input, shape index: {}]   ;;  %s1721_s6 = inlined_call_operand.vmem [shape: f32[1,128], index: 6, kind: input, shape index: {}]   ;;  %s1722_s7 = inlined_call_operand.hbm [shape: f32[8,128], index: 7, kind: output, shape index: {}]  }
   0x1   :  { %v38_v0 = vld [vmem:[%s1716_s1] sm:$0xff]  ;;  %v39_v1 = vld [vmem:[%s1716_s1 + $0x8] sm:$0xff]  ;;  %1313 = vmatprep.subr.bf16.mxu1 %v1461_v4  ;;  %v40_v6 = vld [vmem:[%s1716_s1 + $0x10] sm:$0xff]  ;;  %1214 = vmatprep.mubr.msk.f32.mxu1 %vm1462_vm1, %v1463_v13 }
   0x2   :  { %v186_v2 = vld [vmem:[%s1717_s2] sm:$0xff]  ;;  %v1305_v3 = vpack.c.bf16 %v39_v1, %v38_v0  ;;  %v187_v5 = vld [vmem:[%s1717_s2 + $0x8] sm:$0xff]  ;;  %v41_v7 = vld [vmem:[%s1716_s1 + $0x18] sm:$0xff] }
   0x3   :  { %v1526_v8 = vpack.c.bf16 %v187_v5, %v186_v2  ;;  %v1309_v9 = vpack.c.bf16 %v41_v7, %v40_v6  ;;  %v30_v10 = vld [vmem:[%s1715_s0] sm:$0xff]  ;;  %v188_v11 = vld [vmem:[%s1717_s2 + $0x10] sm:$0xff]  ;;  %v189_v12 = vld [vmem:[%s1717_s2 + $0x18] sm:$0xff] }
   0x4   :  { %1306 = vmatprep.subr.bf16.mxu0 %v1305_v3  ;;  %1194 = vmatprep.mubr.msk.f32.mxu0 %vm48_vm0, %v30_v10  ;;  %v1541_v14 = vpack.c.bf16 %v189_v12, %v188_v11 }
   0x5   :  { %1308 = vmatpush3.bf16.msra.mxu0 %v1305_v3  ;;  %1315 = vmatpush3.bf16.msra.mxu1 %v1526_v8 }
   0x6   :  { %12 = vsyncpa [#allocation4], 0  ;;  %1310 = vmatprep.subr.bf16.mxu0 %v1309_v9  ;;  %1316 = vmatprep.subr.bf16.mxu1 %v1461_v4  ;;  %v31_v15 = vld [vmem:[%s1715_s0 + $0x8] sm:$0xff]  ;;  %v43_v16 = vlaneseq  ;;  %v27_v18 = vld [vmem:[%s1718_s3] sm:$0x1]  ;;  %s1464_s23 = smov 64  }
   0x7   :  { %v28_v19 = vld [vmem:[%s1719_s4] sm:$0x1]  ;;  %s1465_s3 = smov 32   ;;  %v32_v57 = vld [vmem:[%s1715_s0 + $0x10] sm:$0xff]  ;;  %v33_v58 = vld [vmem:[%s1715_s0 + $0x18] sm:$0xff] }
   0x8   :  { %v44_v17 = vshrl.u32 %v43_v16, 7  ;;  %v29_v20 = vadd.f32 %v28_v19, %v27_v18  ;;  %v34_v59 = vld [vmem:[%s1715_s0 + $0x20] sm:$0xff]  ;;  %v35_v60 = vld [vmem:[%s1715_s0 + $0x28] sm:$0xff]  ;;  %v36_v61 = vld [vmem:[%s1715_s0 + $0x30] sm:$0xff] }
   0x9   :  { %1312 = vmatpush3.bf16.msra.mxu0 %v1309_v9  ;;  %1318 = vmatpush3.bf16.msra.mxu1 %v1541_v14  ;;  %v37_v62 = vld [vmem:[%s1715_s0 + $0x38] sm:$0xff] }
   0xa   :  { %1319 = vmatprep.subr.bf16.mxu1 %v1461_v4  ;;  %1325 = vmatprep.subr.bf16.mxu0 %v1461_v4  ;;  %v45_v21 = vsub.s32 0, %v44_v17 }
   0xc   :  { %1195 = vmatmul.mubr.msk.f32.vlgmr.msra.gmra.mrb[0].mxu0 %vm48_vm0, %v31_v15  ;;  %1215 = vmatmul.mubr.f32.vlgmr.msra.gmra.mrb[0].mxu1 %v1463_v13  ;;  %v1568_v22 = vrot.slane %v29_v20, %v45_v21 }
   0xd   :  { %1321 = vmatpush3.bf16.msra.mxu1 %v1526_v8  ;;  %1225 = vmatprep.mubr.msk.f32.mxu1 %vm1462_vm1, %v1463_v13 }
   0xe   :  { %1322 = vmatprep.subr.bf16.mxu1 %v1461_v4  ;;  %1327 = vmatpush3.bf16.msra.mxu0 %v1526_v8 }
   0xf   :  { %1328 = vmatprep.subr.bf16.mxu0 %v1461_v4  ;;  %1197 = vmatprep.mubr.msk.f32.mxu0 %vm48_vm0, %v32_v57 }
  0x10   :  { %1198 = vmatmul.mubr.msk.f32.gmra.mrb[2].mxu0 %vm48_vm0, %v33_v58 }
  0x11   :  { %1324 = vmatpush3.bf16.msra.mxu1 %v1541_v14  ;;  %1200 = vmatprep.mubr.msk.f32.mxu0 %vm48_vm0, %v34_v59 }
  0x12   :  { %1330 = vmatpush3.bf16.msra.mxu0 %v1541_v14  ;;  %1331 = vmatprep.subr.bf16.mxu1 %v1461_v4 }
  0x13   :  { %1337 = vmatprep.subr.bf16.mxu0 %v1461_v4 }
  0x14   :  { %1201 = vmatmul.mubr.msk.f32.gmra.mrb[4].mxu0 %vm48_vm0, %v35_v60 }
  0x15   :  { %1203 = vmatprep.mubr.msk.f32.mxu0 %vm48_vm0, %v36_v61 }
  0x18   :  { %1204 = vmatmul.mubr.msk.f32.gmra.mrb[6].mxu0 %vm48_vm0, %v37_v62 }
  0x19   :  { %1236 = vmatprep.mubr.msk.f32.mxu0 %vm1462_vm1, %v1463_v13 }
  0xdf   :  { %v1196_v23 = vpop.f32.mrb[0].mxu0  ;;  %v260_v24 = vpop.f32.mrb[0].mxu1 }
  0xe0   :  { %v139_v25 = vpop.f32.mrb[1].mxu0  ;;  %v1216_v26 = vpop.f32.mrb[1].mxu1  ;;  %v145_v43 = vadd.f32 %v1196_v23, %v1568_v22 }
  0xe1   :  { %v140_v27 = vadd.f32 %v139_v25, %v1568_v22 }
  0xe3   :  { %v264_v28 = vadd.f32 %v260_v24, %v140_v27  ;;  %v1199_v2 = vpop.f32.mrb[2].mxu0 }
  0xe4   :  { %v149_v3 = vpop.f32.mrb[3].mxu0 }
  0xe5   :  { %1373 = vtanh.f32 %v264_v28  ;;  %v1112_v30 = vmul.f32 -1.442695, %v264_v28  ;;  %v150_v11 = vadd.f32 %v149_v3, %v1568_v22 }
  0xe7   :  { %1375 = vpow2.f32 %v1112_v30  ;;  %v1613_v5 = vpop.f32.mrb[4].mxu0 }
  0xe8   :  { %v1615_v6 = vpop.f32.mrb[5].mxu0 }
  0xeb   :  { %v1617_v7 = vpop.f32.mrb[6].mxu0 }
  0xec   :  { %v1619_v9 = vpop.f32.mrb[7].mxu0 }
  0xef   :  { %v1374_v29 = vpop.eup %1373 }
  0xf0   :  { %274 = vrot.lane.b32.xlu0 %v1374_v29, %s1464_s23 }
  0xf1   :  { %v1376_v31 = vpop.eup %1375 }
  0xf2   :  { %v268_v32 = vadd.f32 1.0, %v1376_v31 }
  0xf4   :  { %1377 = vrcp.f32 %v268_v32  ;;  %v155_v32 = vadd.f32 %v1199_v2, %v1568_v22 }
  0xfe   :  { %v1378_v33 = vpop.eup %1377 }
  0xff   :  { %v272_v36 = vmul.f32 0.0, %v1378_v33 }
 0x162   :  { %v275_v34 = vpop.permute.xlu0 %274 }
 0x163   :  { %v277_v35 = vmul.f32 %v1378_v33, %v275_v34 }
 0x165   :  { %279 = vrot.lane.b32.xlu0 %v277_v35, %s1465_s3 }
 0x1d7   :  { %v280_v37 = vpop.permute.xlu0 %279 }
 0x1d8   :  { %v282_v38 = vadd.f32 %v280_v37, %v272_v36 }
 0x1da   :  { %1379 = vtanh.f32 %v282_v38 }
 0x1e4   :  { %v1380_v39 = vpop.eup %1379 }
 0x1e5   :  { %285 = vrot.lane.b32.xlu1 %v1380_v39, %s1464_s23 }
 0x257   :  { %v286_v40 = vpop.permute.xlu1 %285 }
 0x258   :  { %v288_v41 = vmul.f32 %v1378_v33, %v286_v40 }
 0x25a   :  { %292 = vrot.lane.b32.xlu1 %v288_v41, %s1465_s3 }
 0x2cc   :  { %v293_v42 = vpop.permute.xlu1 %292 }
 0x2cd   :  { %1226 = vmatmul.mubr.msk.f32.vlgmr.msra.gmra.mrb[2].mxu1 %vm48_vm0, %v293_v42 }
 0x2ce   :  { %1333 = vmatpush3.bf16.msra.mxu1 %v1526_v8  ;;  %1247 = vmatprep.mubr.msk.f32.mxu1 %vm1462_vm1, %v1463_v13 }
 0x2cf   :  { %1334 = vmatprep.subr.bf16.mxu1 %v1461_v4 }
 0x2d2   :  { %1336 = vmatpush3.bf16.msra.mxu1 %v1541_v14 }
 0x2d3   :  { %1343 = vmatprep.subr.bf16.mxu1 %v1461_v4 }
 0x3a0   :  { %v362_v44 = vpop.f32.mrb[2].mxu1 }
 0x3a1   :  { %v366_v45 = vadd.f32 %v362_v44, %v145_v43  ;;  %v1227_v46 = vpop.f32.mrb[3].mxu1 }
 0x3a3   :  { %1381 = vtanh.f32 %v366_v45  ;;  %v1114_v48 = vmul.f32 -1.442695, %v366_v45 }
 0x3a5   :  { %1383 = vpow2.f32 %v1114_v48 }
 0x3ad   :  { %v1382_v47 = vpop.eup %1381 }
 0x3ae   :  { %376 = vrot.lane.b32.xlu0 %v1382_v47, %s1464_s23 }
 0x3af   :  { %v1384_v49 = vpop.eup %1383 }
 0x3b0   :  { %v370_v50 = vadd.f32 1.0, %v1384_v49 }
 0x3b2   :  { %1385 = vrcp.f32 %v370_v50  ;;  %v160_v50 = vadd.f32 %v1615_v6, %v1568_v22  ;;  %v165_v6 = vadd.f32 %v1613_v5, %v1568_v22 }
 0x3bc   :  { %v1386_v51 = vpop.eup %1385 }
 0x3bd   :  { %v374_v54 = vmul.f32 %v1386_v51, %v282_v38 }
 0x420   :  { %v377_v52 = vpop.permute.xlu0 %376 }
 0x421   :  { %v379_v53 = vmul.f32 %v1386_v51, %v377_v52 }
 0x423   :  { %381 = vrot.lane.b32.xlu1 %v379_v53, %s1465_s3 }
 0x495   :  { %v382_v55 = vpop.permute.xlu1 %381 }
 0x496   :  { %v384_v56 = vadd.f32 %v382_v55, %v374_v54 }
 0x498   :  { %1387 = vtanh.f32 %v384_v56 }
 0x4a2   :  { %v1388_v63 = vpop.eup %1387 }
 0x4a3   :  { %387 = vrot.lane.b32.xlu0 %v1388_v63, %s1464_s23 }
 0x515   :  { %v388_v0 = vpop.permute.xlu0 %387 }
 0x516   :  { %v390_v1 = vmul.f32 %v1386_v51, %v388_v0 }
 0x518   :  { %394 = vrot.lane.b32.xlu1 %v390_v1, %s1465_s3 }
 0x58a   :  { %v395_v10 = vpop.permute.xlu1 %394 }
 0x58b   :  { %1237 = vmatmul.mubr.msk.f32.vlgmr.msra.gmra.mrb[8].mxu0 %vm48_vm0, %v395_v10 }
 0x58c   :  { %1339 = vmatpush3.bf16.msra.mxu0 %v1526_v8  ;;  %1258 = vmatprep.mubr.msk.f32.mxu0 %vm1462_vm1, %v1463_v13 }
 0x58d   :  { %1340 = vmatprep.subr.bf16.mxu0 %v1461_v4 }
 0x590   :  { %1342 = vmatpush3.bf16.msra.mxu0 %v1541_v14 }
 0x591   :  { %1349 = vmatprep.subr.bf16.mxu0 %v1461_v4 }
 0x65e   :  { %v464_v12 = vpop.f32.mrb[8].mxu0 }
 0x65f   :  { %v468_v15 = vadd.f32 %v464_v12, %v150_v11  ;;  %v1238_v16 = vpop.f32.mrb[9].mxu0 }
 0x661   :  { %1389 = vtanh.f32 %v468_v15  ;;  %v1116_v18 = vmul.f32 -1.442695, %v468_v15 }
 0x663   :  { %1391 = vpow2.f32 %v1116_v18 }
 0x66b   :  { %v1390_v17 = vpop.eup %1389 }
 0x66c   :  { %478 = vrot.lane.b32.xlu0 %v1390_v17, %s1464_s23 }
 0x66d   :  { %v1392_v19 = vpop.eup %1391 }
 0x66e   :  { %v472_v20 = vadd.f32 1.0, %v1392_v19 }
 0x670   :  { %1393 = vrcp.f32 %v472_v20 }
 0x67a   :  { %v1394_v21 = vpop.eup %1393 }
 0x67b   :  { %v476_v25 = vmul.f32 %v1394_v21, %v384_v56 }
 0x6de   :  { %v479_v23 = vpop.permute.xlu0 %478 }
 0x6df   :  { %v481_v24 = vmul.f32 %v1394_v21, %v479_v23 }
 0x6e1   :  { %483 = vrot.lane.b32.xlu1 %v481_v24, %s1465_s3 }
 0x753   :  { %v484_v26 = vpop.permute.xlu1 %483 }
 0x754   :  { %v486_v27 = vadd.f32 %v484_v26, %v476_v25 }
 0x756   :  { %1395 = vtanh.f32 %v486_v27 }
 0x760   :  { %v1396_v28 = vpop.eup %1395 }
 0x761   :  { %489 = vrot.lane.b32.xlu0 %v1396_v28, %s1464_s23 }
 0x7d3   :  { %v490_v29 = vpop.permute.xlu0 %489 }
 0x7d4   :  { %v492_v30 = vmul.f32 %v1394_v21, %v490_v29 }
 0x7d6   :  { %496 = vrot.lane.b32.xlu1 %v492_v30, %s1465_s3 }
 0x848   :  { %v497_v31 = vpop.permute.xlu1 %496 }
 0x849   :  { %1248 = vmatmul.mubr.msk.f32.vlgmr.msra.gmra.mrb[4].mxu1 %vm48_vm0, %v497_v31 }
 0x84a   :  { %1345 = vmatpush3.bf16.msra.mxu1 %v1526_v8  ;;  %1269 = vmatprep.mubr.msk.f32.mxu1 %vm1462_vm1, %v1463_v13 }
 0x84b   :  { %1346 = vmatprep.subr.bf16.mxu1 %v1461_v4 }
 0x84e   :  { %1348 = vmatpush3.bf16.msra.mxu1 %v1541_v14 }
 0x84f   :  { %1355 = vmatprep.subr.bf16.mxu1 %v1461_v4 }
 0x91c   :  { %v566_v33 = vpop.f32.mrb[4].mxu1 }
 0x91d   :  { %v570_v34 = vadd.f32 %v566_v33, %v155_v32  ;;  %v1249_v35 = vpop.f32.mrb[5].mxu1 }
 0x91f   :  { %1397 = vtanh.f32 %v570_v34  ;;  %v1118_v37 = vmul.f32 -1.442695, %v570_v34 }
 0x921   :  { %1399 = vpow2.f32 %v1118_v37 }
 0x929   :  { %v1398_v36 = vpop.eup %1397 }
 0x92a   :  { %580 = vrot.lane.b32.xlu0 %v1398_v36, %s1464_s23 }
 0x92b   :  { %v1400_v38 = vpop.eup %1399 }
 0x92c   :  { %v574_v39 = vadd.f32 1.0, %v1400_v38 }
 0x92e   :  { %1401 = vrcp.f32 %v574_v39 }
 0x938   :  { %v1402_v40 = vpop.eup %1401 }
 0x939   :  { %v578_v43 = vmul.f32 %v1402_v40, %v486_v27  ;;  %v170_v27 = vadd.f32 %v1619_v9, %v1568_v22 }
 0x99c   :  { %v581_v41 = vpop.permute.xlu0 %580 }
 0x99d   :  { %v583_v42 = vmul.f32 %v1402_v40, %v581_v41 }
 0x99f   :  { %585 = vrot.lane.b32.xlu1 %v583_v42, %s1465_s3 }
 0xa11   :  { %v586_v44 = vpop.permute.xlu1 %585 }
 0xa12   :  { %v588_v45 = vadd.f32 %v586_v44, %v578_v43  ;;  %v175_v43 = vadd.f32 %v1617_v7, %v1568_v22  ;;  %v1003_v7 = vld [vmem:[%s1720_s5] sm:$0xff] }
 0xa14   :  { %1403 = vtanh.f32 %v588_v45 }
 0xa1e   :  { %v1404_v46 = vpop.eup %1403 }
 0xa1f   :  { %591 = vrot.lane.b32.xlu0 %v1404_v46, %s1464_s23 }
 0xa91   :  { %v592_v47 = vpop.permute.xlu0 %591 }
 0xa92   :  { %v594_v48 = vmul.f32 %v1402_v40, %v592_v47 }
 0xa94   :  { %598 = vrot.lane.b32.xlu1 %v594_v48, %s1465_s3 }
 0xb06   :  { %v599_v49 = vpop.permute.xlu1 %598 }
 0xb07   :  { %1259 = vmatmul.mubr.msk.f32.vlgmr.msra.gmra.mrb[10].mxu0 %vm48_vm0, %v599_v49 }
 0xb08   :  { %1351 = vmatpush3.bf16.msra.mxu0 %v1526_v8  ;;  %1280 = vmatprep.mubr.msk.f32.mxu0 %vm1462_vm1, %v1463_v13 }
 0xb09   :  { %1352 = vmatprep.subr.bf16.mxu0 %v1461_v4 }
 0xb0c   :  { %1354 = vmatpush3.bf16.msra.mxu0 %v1541_v14 }
 0xb0d   :  { %1361 = vmatprep.subr.bf16.mxu0 %v1461_v4 }
 0xbda   :  { %v668_v51 = vpop.f32.mrb[10].mxu0 }
 0xbdb   :  { %v672_v52 = vadd.f32 %v668_v51, %v160_v50  ;;  %v1260_v53 = vpop.f32.mrb[11].mxu0 }
 0xbdd   :  { %1405 = vtanh.f32 %v672_v52  ;;  %v1120_v55 = vmul.f32 -1.442695, %v672_v52 }
 0xbdf   :  { %1407 = vpow2.f32 %v1120_v55 }
 0xbe7   :  { %v1406_v54 = vpop.eup %1405 }
 0xbe8   :  { %682 = vrot.lane.b32.xlu0 %v1406_v54, %s1464_s23 }
 0xbe9   :  { %v1408_v56 = vpop.eup %1407 }
 0xbea   :  { %v676_v57 = vadd.f32 1.0, %v1408_v56  ;;  %v1004_v56 = vld [vmem:[%s1720_s5 + $0x8] sm:$0xff] }
 0xbec   :  { %1409 = vrcp.f32 %v676_v57  ;;  %v1005_v57 = vld [vmem:[%s1720_s5 + $0x10] sm:$0xff] }
 0xbf6   :  { %v1410_v58 = vpop.eup %1409 }
 0xbf7   :  { %v680_v61 = vmul.f32 %v1410_v58, %v588_v45 }
 0xc5a   :  { %v683_v59 = vpop.permute.xlu0 %682 }
 0xc5b   :  { %v685_v60 = vmul.f32 %v1410_v58, %v683_v59  ;;  %v1006_v59 = vld [vmem:[%s1720_s5 + $0x18] sm:$0xff]  ;;  %s1466_s5 = smov [#allocation3]  }
 0xc5c   :  { %s1096_s19 = sshll.u32 %s1466_s5, 4  ;;  %s1097_s19 = int_to_ptr.vmem [resolvable:$true] %s1096_s19 }
 0xc5d   :  { %687 = vrot.lane.b32.xlu1 %v685_v60, %s1465_s3  ;;  %v1365_v60 = vpack.c.bf16 %v1006_v59, %v1005_v57  ;;  %s1437_s20 = scalar_lea.vmem %s1097_s19, 128  ;;  %p1442_p1 = scmp.lt.s32.totalorder %s1097_s19, %s1097_s19 }
 0xc5e   :  { %p1438_p0 = scmp.ne.s32.totalorder %s1097_s19, %s1437_s20  ;;  %p1443_p2 = scmp.lt.s32.totalorder %s1437_s20, %s1437_s20 }
 0xc60   :  { %p1444_p3 = por %p1443_p2, %p1442_p1 }
 0xc62   :  { %p1445_p4 = pnand %p1444_p3, %p1438_p0 }
 0xccf   :  { %v688_v62 = vpop.permute.xlu1 %687 }
 0xcd0   :  { %v690_v63 = vadd.f32 %v688_v62, %v680_v61 }
 0xcd2   :  { %1411 = vtanh.f32 %v690_v63 }
 0xcdc   :  { %v1412_v0 = vpop.eup %1411 }
 0xcdd   :  { %693 = vrot.lane.b32.xlu0 %v1412_v0, %s1464_s23 }
 0xd4f   :  { %v694_v1 = vpop.permute.xlu0 %693 }
 0xd50   :  { %v696_v2 = vmul.f32 %v1410_v58, %v694_v1  ;;  %v1362_v58 = vpack.c.bf16 %v1004_v56, %v1003_v7  ;;  %v1127_v1 = vld [vmem:[%s1721_s6] ss:$0 sm:$0xff] }
 0xd52   :  { %700 = vrot.lane.b32.xlu1 %v696_v2, %s1465_s3 }
 0xdc4   :  { %v701_v3 = vpop.permute.xlu1 %700 }
 0xdc5   :  { %1270 = vmatmul.mubr.msk.f32.vlgmr.msra.gmra.mrb[6].mxu1 %vm48_vm0, %v701_v3 }
 0xdc6   :  { %1357 = vmatpush3.bf16.msra.mxu1 %v1526_v8  ;;  %1291 = vmatprep.mubr.msk.f32.mxu1 %vm1462_vm1, %v1463_v13 }
 0xdc7   :  { %1358 = vmatprep.subr.bf16.mxu1 %v1461_v4 }
 0xdca   :  { %1360 = vmatpush3.bf16.msra.mxu1 %v1541_v14 }
 0xe98   :  { %v770_v10 = vpop.f32.mrb[6].mxu1 }
 0xe99   :  { %v774_v11 = vadd.f32 %v770_v10, %v165_v6  ;;  %v1271_v12 = vpop.f32.mrb[7].mxu1 }
 0xe9b   :  { %1413 = vtanh.f32 %v774_v11  ;;  %v1122_v16 = vmul.f32 -1.442695, %v774_v11 }
 0xe9d   :  { %1415 = vpow2.f32 %v1122_v16 }
 0xea5   :  { %v1414_v15 = vpop.eup %1413 }
 0xea6   :  { %784 = vrot.lane.b32.xlu0 %v1414_v15, %s1464_s23 }
 0xea7   :  { %v1416_v8 = vpop.eup %1415 }
 0xea8   :  { %v778_v17 = vadd.f32 1.0, %v1416_v8 }
 0xeaa   :  { %1417 = vrcp.f32 %v778_v17 }
 0xeb4   :  { %v1418_v18 = vpop.eup %1417 }
 0xeb5   :  { %v782_v14 = vmul.f32 %v1418_v18, %v690_v63 }
 0xf18   :  { %v785_v19 = vpop.permute.xlu0 %784 }
 0xf19   :  { %v787_v20 = vmul.f32 %v1418_v18, %v785_v19 }
 0xf1b   :  { %789 = vrot.lane.b32.xlu1 %v787_v20, %s1465_s3 }
 0xf8d   :  { %v790_v21 = vpop.permute.xlu1 %789 }
 0xf8e   :  { %v792_v5 = vadd.f32 %v790_v21, %v782_v14 }
 0xf90   :  { %1419 = vtanh.f32 %v792_v5 }
 0xf9a   :  { %v1420_v23 = vpop.eup %1419 }
 0xf9b   :  { %795 = vrot.lane.b32.xlu0 %v1420_v23, %s1464_s23 }
0x100d   :  { %v796_v24 = vpop.permute.xlu0 %795 }
0x100e   :  { %v798_v25 = vmul.f32 %v1418_v18, %v796_v24 }
0x1010   :  { %802 = vrot.lane.b32.xlu1 %v798_v25, %s1465_s3 }
0x1082   :  { %v803_v26 = vpop.permute.xlu1 %802 }
0x1083   :  { %1281 = vmatmul.mubr.msk.f32.vlgmr.msra.gmra.mrb[12].mxu0 %vm48_vm0, %v803_v26 }
0x1084   :  { %1302 = vmatprep.mubr.msk.f32.mxu0 %vm1462_vm1, %v1463_v13  ;;  %1363 = vmatpush3.bf16.msra.mxu0 %v1362_v58 }
0x1085   :  { %1364 = vmatprep.subr.bf16.mxu0 %v1461_v4 }
0x1088   :  { %1366 = vmatpush3.bf16.msra.mxu0 %v1365_v60 }
0x1156   :  { %v872_v28 = vpop.f32.mrb[12].mxu0 }
0x1157   :  { %v876_v29 = vadd.f32 %v872_v28, %v170_v27  ;;  %v1282_v30 = vpop.f32.mrb[13].mxu0 }
0x1159   :  { %1421 = vtanh.f32 %v876_v29  ;;  %v1124_v32 = vmul.f32 -1.442695, %v876_v29 }
0x115b   :  { %1423 = vpow2.f32 %v1124_v32 }
0x1163   :  { %v1422_v31 = vpop.eup %1421 }
0x1164   :  { %886 = vrot.lane.b32.xlu0 %v1422_v31, %s1464_s23 }
0x1165   :  { %v1424_v33 = vpop.eup %1423 }
0x1166   :  { %v880_v34 = vadd.f32 1.0, %v1424_v33 }
0x1168   :  { %1425 = vrcp.f32 %v880_v34 }
0x1172   :  { %v1426_v35 = vpop.eup %1425 }
0x1173   :  { %v884_v13 = vmul.f32 %v1426_v35, %v792_v5 }
0x11d6   :  { %v887_v36 = vpop.permute.xlu0 %886 }
0x11d7   :  { %v889_v37 = vmul.f32 %v1426_v35, %v887_v36 }
0x11d9   :  { %891 = vrot.lane.b32.xlu1 %v889_v37, %s1465_s3 }
0x124b   :  { %v892_v38 = vpop.permute.xlu1 %891 }
0x124c   :  { %v894_v9 = vadd.f32 %v892_v38, %v884_v13 }
0x124e   :  { %1427 = vtanh.f32 %v894_v9 }
0x1258   :  { %v1428_v39 = vpop.eup %1427 }
0x1259   :  { %897 = vrot.lane.b32.xlu0 %v1428_v39, %s1464_s23 }
0x12cb   :  { %v898_v40 = vpop.permute.xlu0 %897 }
0x12cc   :  { %v900_v41 = vmul.f32 %v1426_v35, %v898_v40 }
0x12ce   :  { %904 = vrot.lane.b32.xlu1 %v900_v41, %s1465_s3 }
0x1340   :  { %v905_v42 = vpop.permute.xlu1 %904 }
0x1341   :  { %1292 = vmatmul.mubr.msk.f32.vlgmr.msra.gmra.mrb[8].mxu1 %vm48_vm0, %v905_v42 }
0x1414   :  { %v974_v44 = vpop.f32.mrb[8].mxu1 }
0x1415   :  { %v978_v45 = vadd.f32 %v974_v44, %v175_v43  ;;  %v1293_v46 = vpop.f32.mrb[9].mxu1 }
0x1417   :  { %1429 = vtanh.f32 %v978_v45  ;;  %v1126_v48 = vmul.f32 -1.442695, %v978_v45 }
0x1419   :  { %1431 = vpow2.f32 %v1126_v48 }
0x1421   :  { %v1430_v47 = vpop.eup %1429 }
0x1422   :  { %988 = vrot.lane.b32.xlu0 %v1430_v47, %s1464_s23 }
0x1423   :  { %v1432_v49 = vpop.eup %1431 }
0x1424   :  { %v982_v50 = vadd.f32 1.0, %v1432_v49 }
0x1426   :  { %1433 = vrcp.f32 %v982_v50 }
0x1430   :  { %v1434_v51 = vpop.eup %1433 }
0x1431   :  { %v986_v54 = vmul.f32 %v1434_v51, %v894_v9 }
0x1494   :  { %v989_v52 = vpop.permute.xlu0 %988 }
0x1495   :  { %v991_v53 = vmul.f32 %v1434_v51, %v989_v52 }
0x1497   :  { %993 = vrot.lane.b32.xlu1 %v991_v53, %s1465_s3 }
0x1509   :  { %v994_v55 = vpop.permute.xlu1 %993 }
0x150a   :  { %v996_v22 = vadd.f32 %v994_v55, %v986_v54 }
0x150c   :  { %1435 = vtanh.f32 %v996_v22 }
0x1516   :  { %v1436_v61 = vpop.eup %1435 }
0x1517   :  { %999 = vrot.lane.b32.xlu0 %v1436_v61, %s1464_s23 }
0x1589   :  { %v1000_v62 = vpop.permute.xlu0 %999 }
0x158a   :  { %v1002_v63 = vmul.f32 %v1434_v51, %v1000_v62 }
0x158c   :  { %1015 = vrot.lane.b32.xlu1 %v1002_v63, %s1465_s3 }
0x15fe   :  { %v1016_v0 = vpop.permute.xlu1 %1015 }
0x15ff   :  { %1303 = vmatmul.mubr.msk.f32.vlgmr.msra.gmra.mrb[14].mxu0 %vm48_vm0, %v1016_v0 }
0x16d2   :  { %v1085_v2 = vpop.f32.mrb[14].mxu0 }
0x16d3   :  { %v1086_v3 = vadd.f32 %v1127_v1, %v1085_v2  ;;  %v1304_v4 = vpop.f32.mrb[15].mxu0 }
0x16d5   :  { %1089 = vst [vmem:[#allocation3] sm:$0xff] %v1086_v3 }
0x16d6   :  { %1448 = shalt.err (!%p1445_p4)
}
0x16d7   :  { %s1449_s23 = scalar_lea.hbm %s1722_s7, 128 }
0x16d8   :  { %p1450_p5 = scmp.ne.s32.totalorder %s1722_s7, %s1449_s23  ;;  %p1453_p6 = scmp.lt.u32.totalorder %s1449_s23, %s1722_s7 }
0x16da   :  { %p1455_p7 = pnand %p1453_p6, %p1450_p5 }
0x16dc   :  { %1458 = shalt.err (!%p1455_p7)
}
0x16dd   :  { %1099 = dma.vmem_to_hbm [thread:$0]  %s1097_s19, 128, %s1722_s7, [#allocation4]  }
0x16de   :  { %1459 = dma.done.wait [#allocation4], 128  }
0x16df   :  { %1460 = vsyncadd [#allocation4], 4294967168 }
0x16e0   :  { %1103 = vsyncpa [#allocation4], 1 }

</bundles_post_ra>
